<compile_context>
chip_gen: v7x
topology: tpu7x:2x2x1
jax: 0.10.0
libtpu: 0.0.40
codegen_flags: <defaults>
</compile_context>

<pallas_src>
import jax
import jax.numpy as jnp
from jax import lax
from jax.experimental import pallas as pl
from jax.experimental.pallas import tpu as pltpu


def ada_layer_norm_kernel(scale1_ref, shift_ref, x_ref, o_ref):
    """scale1_ref/shift_ref: (1, D) f32; x_ref/o_ref: (TS, D)."""
    eps = 1e-5

    # LayerNorm (no affine) over the lane (last) dim; accumulate in f32.
    x = x_ref[...].astype(jnp.float32)                      # (TS, D)
    mean = jnp.mean(x, axis=-1, keepdims=True)               # (TS, 1)  XLU reduce
    xc = x - mean                                            # reuse centered x
    var = jnp.mean(xc * xc, axis=-1, keepdims=True)          # (TS, 1)
    xn = xc * lax.rsqrt(var + eps)                           # EUP rsqrt

    # Modulation: broadcast precomputed (1 + scale) and shift over rows.
    o_ref[...] = (xn * scale1_ref[...] + shift_ref[...]).astype(o_ref.dtype)


def _round_up(n, m):
    return ((n + m - 1) // m) * m


def ada_layer_norm(x, timestep, emb_table, w, b, *, block_rows=512):
    """x: (B, S, D); timestep: scalar int32; emb_table: (num_emb, D);
    w: (D, 2D) (transpose of torch Linear.weight); b: (2D,)."""
    B, S, D = x.shape
    out_dtype = x.dtype

    # --- timestep projection (gather + SiLU + GEMV) once, in plain JAX -------
    e = jnp.take(emb_table, timestep, axis=0).astype(jnp.float32)   # (D,)
    e = e * jax.nn.sigmoid(e)                                       # SiLU
    proj = e @ w.astype(jnp.float32) + b.astype(jnp.float32)        # (2D,)
    scale1 = (1.0 + proj[:D]).reshape(1, D)                         # (1, D)
    shift = proj[D:].reshape(1, D)                                  # (1, D)

    # --- flatten to a lane-dense (N, D) slab and tile over rows --------------
    N = B * S
    x2 = x.reshape(N, D)

    # Row tile: multiple of 8 (sublane), capped so f32 in+out double buffers
    # stay comfortably inside v5e/v6e/v7x scoped-VMEM defaults.
    ts = min(block_rows, _round_up(N, 8))
    n_pad = _round_up(N, ts)
    if n_pad != N:
        x2 = jnp.pad(x2, ((0, n_pad - N), (0, 0)))
    grid = (n_pad // ts,)

    grid_spec = pltpu.PrefetchScalarGridSpec(
        num_scalar_prefetch=0,
        grid=grid,
        in_specs=[
            pl.BlockSpec((1, D), lambda i: (0, 0)),      # (1 + scale), resident
            pl.BlockSpec((1, D), lambda i: (0, 0)),      # shift, resident
            pl.BlockSpec((ts, D), lambda i: (i, 0)),     # x row tile
        ],
        out_specs=pl.BlockSpec((ts, D), lambda i: (i, 0)),
    )

    out = pl.pallas_call(
        ada_layer_norm_kernel,
        out_shape=jax.ShapeDtypeStruct((n_pad, D), out_dtype),
        grid_spec=grid_spec,
        compiler_params=pltpu.CompilerParams(
            dimension_semantics=("parallel",)),
    )(scale1, shift, x2)

    return out[:N].reshape(B, S, D)


def ada_layer_norm_ref(x, timestep, emb_table, w, b):
    """Pure-JAX reference mirroring the PyTorch module."""
    e = emb_table[timestep]
    e = e * jax.nn.sigmoid(e)
    proj = e @ w + b
    D = x.shape[-1]
    scale, shift = proj[:D], proj[D:]
    mean = jnp.mean(x, axis=-1, keepdims=True)
    var = jnp.mean((x - mean) ** 2, axis=-1, keepdims=True)
    xn = (x - mean) / jnp.sqrt(var + 1e-5)
    return xn * (1.0 + scale) + shift


if __name__ == "__main__":
    B, S, D = 2, 8, 32
    num_embeddings = 16

    key = jax.random.PRNGKey(0)
    k_x, k_emb, k_w, k_b = jax.random.split(key, 4)

    x = jax.random.normal(k_x, (B, S, D), dtype=jnp.float32)
    emb_table = 0.02 * jax.random.normal(k_emb, (num_embeddings, D), dtype=jnp.float32)
    # torch Linear.weight is (2D, D); we build its transpose (D, 2D) directly.
    w = 0.02 * jax.random.normal(k_w, (D, 2 * D), dtype=jnp.float32)
    b = 0.02 * jax.random.normal(k_b, (2 * D,), dtype=jnp.float32)

    timestep = jnp.int32(3)

    out = ada_layer_norm(x, timestep, emb_table, w, b)
    out = jax.block_until_ready(out)

    ref = ada_layer_norm_ref(x, timestep, emb_table, w, b)
    assert out.shape == (B, S, D)
    assert jnp.allclose(out, ref, atol=1e-5, rtol=1e-5)

    print("KERNEL_OK")
</pallas_src>

<mosaic_0001>
module attributes {stable_mosaic.version = 11 : i64} {
  func.func @ada_layer_norm_kernel(%arg0: i32, %arg1: memref<1x32xf32, #tpu.memory_space<vmem>>, %arg2: memref<1x32xf32, #tpu.memory_space<vmem>>, %arg3: memref<16x32xf32, #tpu.memory_space<vmem>>, %arg4: memref<16x32xf32, #tpu.memory_space<vmem>>) attributes {dimension_semantics = [#tpu.dimension_semantics<parallel>], iteration_bounds = array<i64: 1>, scalar_prefetch = 0 : i64, scratch_operands = 0 : i64, tpu.core_type = #tpu.core_type<tc>, window_params = [{pipeline_mode = #tpu.pipeline_mode<synchronous>, transform_indices = @transform_0, window_bounds = array<i64: 1, 32>}, {pipeline_mode = #tpu.pipeline_mode<synchronous>, transform_indices = @transform_1, window_bounds = array<i64: 1, 32>}, {transform_indices = @transform_2, window_bounds = array<i64: 16, 32>}, {transform_indices = @transform_3, window_bounds = array<i64: 16, 32>}]} {
    %c0 = arith.constant 0 : index
    %c0_0 = arith.constant 0 : index
    %0 = vector.load %arg3[%c0, %c0_0] : memref<16x32xf32, #tpu.memory_space<vmem>>, vector<16x32xf32>
    %cst = arith.constant dense<0.000000e+00> : vector<16xf32>
    %1 = vector.multi_reduction <add>, %0, %cst [1] : vector<16x32xf32> to vector<16xf32>
    %2 = vector.shape_cast %1 : vector<16xf32> to vector<16x1xf32>
    %cst_1 = arith.constant 3.200000e+01 : f32
    %3 = vector.broadcast %cst_1 : f32 to vector<16x1xf32>
    %4 = arith.divf %2, %3 : vector<16x1xf32>
    %5 = vector.broadcast %4 : vector<16x1xf32> to vector<16x32xf32>
    %6 = arith.subf %0, %5 : vector<16x32xf32>
    %7 = arith.mulf %6, %6 : vector<16x32xf32>
    %cst_2 = arith.constant dense<0.000000e+00> : vector<16xf32>
    %8 = vector.multi_reduction <add>, %7, %cst_2 [1] : vector<16x32xf32> to vector<16xf32>
    %9 = vector.shape_cast %8 : vector<16xf32> to vector<16x1xf32>
    %cst_3 = arith.constant 3.200000e+01 : f32
    %10 = vector.broadcast %cst_3 : f32 to vector<16x1xf32>
    %11 = arith.divf %9, %10 : vector<16x1xf32>
    %cst_4 = arith.constant 9.99999974E-6 : f32
    %12 = vector.broadcast %cst_4 : f32 to vector<16x1xf32>
    %13 = arith.addf %11, %12 : vector<16x1xf32>
    %14 = math.rsqrt %13 : vector<16x1xf32>
    %15 = vector.broadcast %14 : vector<16x1xf32> to vector<16x32xf32>
    %16 = arith.mulf %6, %15 : vector<16x32xf32>
    %c0_5 = arith.constant 0 : index
    %c0_6 = arith.constant 0 : index
    %17 = vector.load %arg1[%c0_5, %c0_6] : memref<1x32xf32, #tpu.memory_space<vmem>>, vector<1x32xf32>
    %18 = vector.broadcast %17 : vector<1x32xf32> to vector<16x32xf32>
    %19 = arith.mulf %16, %18 : vector<16x32xf32>
    %c0_7 = arith.constant 0 : index
    %c0_8 = arith.constant 0 : index
    %20 = vector.load %arg2[%c0_7, %c0_8] : memref<1x32xf32, #tpu.memory_space<vmem>>, vector<1x32xf32>
    %21 = vector.broadcast %20 : vector<1x32xf32> to vector<16x32xf32>
    %22 = arith.addf %19, %21 : vector<16x32xf32>
    %c0_9 = arith.constant 0 : index
    %c0_10 = arith.constant 0 : index
    %23 = vector.load %arg4[%c0_9, %c0_10] : memref<16x32xf32, #tpu.memory_space<vmem>>, vector<16x32xf32>
    tpu.vector_store %arg4[%c0_9, %c0_10], %22 {strides = array<i32>} : memref<16x32xf32, #tpu.memory_space<vmem>>, vector<16x32xf32>,
    return
  }
  func.func @transform_0(%arg0: i32) -> (i32, i32) {
    %c0_i32 = arith.constant 0 : i32
    %c0_i32_0 = arith.constant 0 : i32
    %c0_i32_1 = arith.constant 0 : i32
    return %c0_i32, %c0_i32_0 : i32, i32
  }
  func.func @transform_1(%arg0: i32) -> (i32, i32) {
    %c0_i32 = arith.constant 0 : i32
    %c0_i32_0 = arith.constant 0 : i32
    %c0_i32_1 = arith.constant 0 : i32
    return %c0_i32, %c0_i32_0 : i32, i32
  }
  func.func @transform_2(%arg0: i32) -> (i32, i32) {
    %c0_i32 = arith.constant 0 : i32
    %c0_i32_0 = arith.constant 0 : i32
    return %arg0, %c0_i32 : i32, i32
  }
  func.func @transform_3(%arg0: i32) -> (i32, i32) {
    %c0_i32 = arith.constant 0 : i32
    %c0_i32_0 = arith.constant 0 : i32
    return %arg0, %c0_i32 : i32, i32
  }
}

</mosaic_0001>

<bundles_post_ra>
// kernel: tpu_custom_call.1
= control target key start
LH: loop header
LB: loop body
LE: loop exit
PB: predicated region body
PF: predicated region fallthrough
CT: control target
= control target key end

     0   :  { %8 = vsyncpa [#allocation3], 0  ;;  %s275_s0 = inlined_call_operand.hbm [shape: f32[1,32], index: 0, kind: input, shape index: {}]   ;;  %s276_s1 = inlined_call_operand.vmem [shape: f32[1,32], index: 1, kind: input, shape index: {}]   ;;  %s277_s2 = inlined_call_operand.hbm [shape: f32[16,32], index: 2, kind: input, shape index: {}]   ;;  %s278_s3 = inlined_call_operand.hbm [shape: f32[16,32], index: 3, kind: output, shape index: {}]  }
   0x1   :  { %9 = vsyncpa [#allocation6], 0 }
   0x2   :  { %10 = vsyncpa [#allocation4], 0  ;;  %s192_s12 = smov [#allocation2]   ;;  %s193_s14 = smov [#allocation5]  }
   0x3   :  { %s17_s13 = sshll.u32 %s192_s12, 4  ;;  %s28_s15 = sshll.u32 %s193_s14, 4  ;;  %s18_s13 = int_to_ptr.vmem [resolvable:$true] %s17_s13  ;;  %s217_s15 = int_to_ptr.vmem [resolvable:$true] %s28_s15 }
   0x4   :  { %s120_s18 = scalar_lea.hbm %s275_s0, 16 }
   0x5   :  { %p121_p0 = scmp.ne.s32.totalorder %s275_s0, %s120_s18  ;;  %p124_p1 = scmp.lt.u32.totalorder %s120_s18, %s275_s0 }
   0x7   :  { %p126_p2 = pnand %p124_p1, %p121_p0 }
   0x9   :  { %129 = shalt.err (!%p126_p2)
}
   0xa   :  { %s130_s23 = scalar_lea.vmem %s18_s13, 16  ;;  %s134_s24 = scalar_lea.vmem %s18_s13, 32 }
   0xb   :  { %p131_p3 = scmp.ne.s32.totalorder %s18_s13, %s130_s23  ;;  %p135_p4 = scmp.lt.s32.totalorder %s18_s13, %s18_s13 }
   0xc   :  { %p136_p5 = scmp.lt.s32.totalorder %s134_s24, %s130_s23 }
   0xe   :  { %p137_p6 = por %p136_p5, %p135_p4 }
  0x10   :  { %p138_p7 = pnand %p137_p6, %p131_p3 }
  0x12   :  { %141 = shalt.err (!%p138_p7)
}
  0x13   :  { %20 = dma.hbm_to_vmem [thread:$0]  %s275_s0, 16, %s18_s13, [#allocation3]  }
  0x14   :  { %s142_s29 = scalar_lea.hbm %s277_s2, 256 }
  0x15   :  { %p143_p8 = scmp.ne.s32.totalorder %s277_s2, %s142_s29  ;;  %p146_p9 = scmp.lt.u32.totalorder %s142_s29, %s277_s2 }
  0x17   :  { %p148_p10 = pnand %p146_p9, %p143_p8 }
  0x19   :  { %151 = shalt.err (!%p148_p10)
}
  0x1a   :  { %s152_s7 = scalar_lea.vmem %s217_s15, 256  ;;  %p157_p12 = scmp.lt.s32.totalorder %s217_s15, %s217_s15 }
  0x1b   :  { %p153_p11 = scmp.ne.s32.totalorder %s217_s15, %s152_s7  ;;  %p158_p13 = scmp.lt.s32.totalorder %s152_s7, %s152_s7 }
  0x1d   :  { %p159_p0 = por %p158_p13, %p157_p12 }
  0x1f   :  { %p160_p1 = pnand %p159_p0, %p153_p11 }
  0x21   :  { %163 = shalt.err (!%p160_p1)
}
  0x22   :  { %s194_s0 = smov 128   ;;  %s195_s8 = smov 8  }
  0x23   :  { %34 = dma.hbm_to_vmem [thread:$0]  %s277_s2, 256, %s217_s15, [#allocation6], %s194_s0, %s194_s0, %s195_s8  }
  0x24   :  { %186 = dma.done.wait [#allocation3], 16  }
  0x25   :  { %187 = vsyncadd [#allocation3], 4294967280 }
  0x26   :  { %188 = dma.done.wait [#allocation6], 256  }
  0x27   :  { %189 = vsyncadd [#allocation6], 4294967040  ;;  %vm43_vm0 = vcmask 261120   ;;  %v41_v0 = vld [vmem:[#allocation5] sm:$0xff]  ;;  %v42_v1 = vld [vmem:[#allocation5 + $0x8] sm:$0xff]  ;;  %s196_s12 = smov [#allocation7]  }
  0x28   :  { %v44_v2 = vsel %vm43_vm0, %v41_v0, 0.0  ;;  %v47_v3 = vsel %vm43_vm0, %v42_v1, 0.0  ;;  %v109_v21 = vld [vmem:[#allocation2] ss:$0 sm:$0xff]  ;;  %s96_s13 = sshll.u32 %s196_s12, 4  ;;  %s97_s13 = int_to_ptr.vmem [resolvable:$true] %s96_s13 }
  0x29   :  { %45 = vadd.xlane.f32.xlu0 %v44_v2  ;;  %v110_v23 = vld [vmem:[%s276_s1] ss:$0 sm:$0xff]  ;;  %s164_s14 = scalar_lea.vmem %s97_s13, 256  ;;  %p169_p3 = scmp.lt.s32.totalorder %s97_s13, %s97_s13 }
  0x2a   :  { %p165_p2 = scmp.ne.s32.totalorder %s97_s13, %s164_s14  ;;  %p170_p4 = scmp.lt.s32.totalorder %s164_s14, %s164_s14 }
  0x2c   :  { %p171_p5 = por %p170_p4, %p169_p3 }
  0x2d   :  { %48 = vadd.xlane.f32.xlu0 %v47_v3 }
  0x2e   :  { %p172_p6 = pnand %p171_p5, %p165_p2 }
  0xb6   :  { %v46_v4 = vpop.xlane.xlu0 %45 }
  0xb7   :  { %v51_v5 = vmul.f32 0.03125, %v46_v4 }
  0xb9   :  { %v53_v6 = vsub.f32 %v41_v0, %v51_v5 }
  0xba   :  { %v49_v7 = vpop.xlane.xlu0 %48 }
  0xbb   :  { %v52_v8 = vmul.f32 0.03125, %v49_v7  ;;  %v55_v9 = vmul.f32 %v53_v6, %v53_v6 }
  0xbd   :  { %v54_v10 = vsub.f32 %v42_v1, %v52_v8  ;;  %v57_v11 = vsel %vm43_vm0, %v55_v9, 0.0 }
  0xbe   :  { %58 = vadd.xlane.f32.xlu1 %v57_v11 }
  0xbf   :  { %v56_v12 = vmul.f32 %v54_v10, %v54_v10 }
  0xc1   :  { %v60_v13 = vsel %vm43_vm0, %v56_v12, 0.0 }
  0xc2   :  { %61 = vadd.xlane.f32.xlu1 %v60_v13 }
 0x14b   :  { %v59_v14 = vpop.xlane.xlu1 %58 }
 0x14c   :  { %v63_v15 = vmul.f32 0.03125, %v59_v14 }
 0x14e   :  { %v65_v16 = vadd.f32 1e-05, %v63_v15 }
 0x14f   :  { %v62_v17 = vpop.xlane.xlu1 %61 }
 0x150   :  { %116 = vrsqrt.f32 %v65_v16  ;;  %v64_v18 = vmul.f32 0.03125, %v62_v17 }
 0x152   :  { %v66_v19 = vadd.f32 1e-05, %v64_v18 }
 0x154   :  { %118 = vrsqrt.f32 %v66_v19 }
 0x15a   :  { %v117_v20 = vpop.eup %116 }
 0x15b   :  { %v69_v22 = vmul.f32 %v117_v20, %v53_v6 }
 0x15d   :  { %v78_v24 = vmul.f32 %v109_v21, %v69_v22 }
 0x15e   :  { %v119_v25 = vpop.eup %118 }
 0x15f   :  { %v70_v26 = vmul.f32 %v119_v25, %v54_v10  ;;  %v87_v27 = vadd.f32 %v110_v23, %v78_v24 }
 0x161   :  { %v79_v28 = vmul.f32 %v109_v21, %v70_v26  ;;  %89 = vst.msk [vmem:[#allocation7] sm:$0xff] %vm43_vm0, %v87_v27 }
 0x163   :  { %v88_v29 = vadd.f32 %v110_v23, %v79_v28 }
 0x165   :  { %90 = vst.msk [vmem:[#allocation7 + $0x8] sm:$0xff] %vm43_vm0, %v88_v29 }
 0x166   :  { %175 = shalt.err (!%p172_p6)
}
 0x167   :  { %s176_s16 = scalar_lea.hbm %s278_s3, 256 }
 0x168   :  { %p177_p7 = scmp.ne.s32.totalorder %s278_s3, %s176_s16  ;;  %p180_p8 = scmp.lt.u32.totalorder %s176_s16, %s278_s3 }
 0x16a   :  { %p182_p9 = pnand %p180_p8, %p177_p7 }
 0x16c   :  { %185 = shalt.err (!%p182_p9)
}
 0x16d   :  { %102 = dma.vmem_to_hbm [thread:$0]  %s97_s13, 256, %s278_s3, [#allocation4], %s194_s0, %s194_s0, %s195_s8  }
 0x16e   :  { %190 = dma.done.wait [#allocation4], 256  }
 0x16f   :  { %191 = vsyncadd [#allocation4], 4294967040 }
 0x170   :  { %106 = vsyncpa [#allocation3], 1 }
 0x171   :  { %107 = vsyncpa [#allocation6], 1 }
 0x172   :  { %108 = vsyncpa [#allocation4], 1 }

</bundles_post_ra>
